<compile_context>
chip_gen: v7x
topology: tpu7x:2x2x1
jax: 0.10.0
libtpu: 0.0.40
codegen_flags: <defaults>
</compile_context>

<pallas_src>
import jax
import jax.numpy as jnp
from jax.experimental import pallas as pl
from jax.experimental.pallas import tpu as pltpu


def mlp_kernel(xT_ref, w1T_ref, b1_ref, w2_ref, b2_ref, o_ref):
    # xT_ref:(F,TB)  w1T_ref:(H,F)  b1_ref:(H,1)  w2_ref:(H,1)  o_ref:(1,TB)
    # fc1 on the MXU (f32 accumulation); batch lives on the lane axis.
    h = jnp.dot(w1T_ref[...], xT_ref[...], preferred_element_type=jnp.float32)
    h = jnp.maximum(h + b1_ref[...], 0.0)  # (H,1) bias broadcasts over lanes

    # fc2: output width is 1 -> VPU multiply + sublane (H-axis) reduce.
    logits = jnp.sum(h * w2_ref[...], axis=0, keepdims=True) + b2_ref[0]  # (1,TB)

    # sigmoid(x) = 1 / (1 + exp(-x)); exp + approx reciprocal both use EUP.
    o_ref[...] = pl.reciprocal(1.0 + jnp.exp(-logits), approx=True).astype(o_ref.dtype)


def net_forward(x, w1, b1, w2, b2, *, tb=8192):
    """x:(B,F) f32, w1:(F,H), b1:(1,H), w2:(H,1), b2:(1,1) -> (B,1) f32."""
    B, F = x.shape
    H = w1.shape[1]

    # Lane-dense layout plumbing (layout only, tiny weights).
    x_t = x.T                      # (F, B): batch on the lane axis
    w1_t = w1.T                    # (H, F)
    b1_col = b1.reshape(H, 1)      # column bias, broadcasts over lanes
    b2_flat = b2.reshape(1)        # scalar in SMEM, 1-D to avoid SMEM padding

    # Batch tile selection:
    #  - tiny B: one block covering the whole batch (block == full dims, so no
    #    128-divisibility requirement).
    #  - larger B: tile is a multiple of 128 (lane axis), capped at `tb`, and
    #    sized so the grid has >=2 steps (v7x megacore sharding). The trailing
    #    partial block is handled by Pallas; pad columns are independent and
    #    never written back to the (1, B) output array.
    if B <= 256:
        TB = B
    else:
        TB = min(tb, ((pl.cdiv(B, 2) + 127) // 128) * 128)
    grid = (pl.cdiv(B, TB),)

    out_row = pl.pallas_call(
        mlp_kernel,
        out_shape=jax.ShapeDtypeStruct((1, B), jnp.float32),
        grid=grid,
        in_specs=[
            # x^T: streamed lane-dense batch tiles (double-buffered).
            pl.BlockSpec((F, TB), lambda i: (0, i)),
            # Weights / biases: constant block index -> VMEM-resident.
            pl.BlockSpec((H, F), lambda i: (0, 0)),
            pl.BlockSpec((H, 1), lambda i: (0, 0)),
            pl.BlockSpec((H, 1), lambda i: (0, 0)),
            # b2 scalar in SMEM (1-D block avoids (8,128)-word SMEM padding).
            pl.BlockSpec((1,), lambda i: (0,), memory_space=pltpu.SMEM),
        ],
        # Lane-dense output row: unmasked stores, no lane padding.
        out_specs=pl.BlockSpec((1, TB), lambda i: (0, i)),
        compiler_params=pltpu.CompilerParams(
            dimension_semantics=("parallel",),
        ),
    )(x_t, w1_t, b1_col, w2, b2_flat)

    return out_row.reshape(B, 1)


def init_params(key, input_size, hidden_size):
    """Deterministic init mimicking torch.nn.Linear's U(-1/sqrt(fan_in), 1/sqrt(fan_in))."""
    k1, k2, k3, k4 = jax.random.split(key, 4)
    bound1 = 1.0 / jnp.sqrt(input_size)
    bound2 = 1.0 / jnp.sqrt(hidden_size)
    w1 = jax.random.uniform(k1, (input_size, hidden_size), jnp.float32, -bound1, bound1)
    b1 = jax.random.uniform(k2, (1, hidden_size), jnp.float32, -bound1, bound1)
    w2 = jax.random.uniform(k3, (hidden_size, 1), jnp.float32, -bound2, bound2)
    b2 = jax.random.uniform(k4, (1, 1), jnp.float32, -bound2, bound2)
    return w1, b1, w2, b2


def _reference(x, w1, b1, w2, b2):
    return jax.nn.sigmoid(jnp.maximum(x @ w1 + b1, 0.0) @ w2 + b2)


if __name__ == "__main__":
    # Breast-cancer dataset: 30 features; small hidden layer.
    input_size, hidden_size = 30, 32

    key = jax.random.PRNGKey(0)
    kx, kp, kx2 = jax.random.split(key, 3)
    w1, b1, w2, b2 = init_params(kp, input_size, hidden_size)

    # Small batch: single full-extent block (TB == B).
    x_small = jax.random.normal(kx, (8, input_size), jnp.float32)
    out_small = net_forward(x_small, w1, b1, w2, b2)
    jax.block_until_ready(out_small)
    ref_small = _reference(x_small, w1, b1, w2, b2)
    assert out_small.shape == (8, 1)
    assert jnp.allclose(out_small, ref_small, atol=2e-3, rtol=2e-3)

    # Larger batch: exercises the lane-dense batch grid (>=2 steps) and the
    # Pallas-handled trailing partial block (1000 = 512 + 488).
    x_big = jax.random.normal(kx2, (1000, input_size), jnp.float32)
    out_big = net_forward(x_big, w1, b1, w2, b2)
    jax.block_until_ready(out_big)
    ref_big = _reference(x_big, w1, b1, w2, b2)
    assert out_big.shape == (1000, 1)
    assert jnp.allclose(out_big, ref_big, atol=2e-3, rtol=2e-3)

    print("KERNEL_OK")
</pallas_src>

<mosaic_0001>
module attributes {stable_mosaic.version = 11 : i64} {
  func.func @mlp_kernel(%arg0: i32, %arg1: memref<30x8xf32, #tpu.memory_space<vmem>>, %arg2: memref<32x30xf32, #tpu.memory_space<vmem>>, %arg3: memref<32x1xf32, #tpu.memory_space<vmem>>, %arg4: memref<32x1xf32, #tpu.memory_space<vmem>>, %arg5: memref<1xf32, #tpu.memory_space<smem>>, %arg6: memref<1x8xf32, #tpu.memory_space<vmem>>) attributes {dimension_semantics = [#tpu.dimension_semantics<parallel>], iteration_bounds = array<i64: 1>, scalar_prefetch = 0 : i64, scratch_operands = 0 : i64, tpu.core_type = #tpu.core_type<tc>, window_params = [{transform_indices = @transform_0, window_bounds = array<i64: 30, 8>}, {pipeline_mode = #tpu.pipeline_mode<synchronous>, transform_indices = @transform_1, window_bounds = array<i64: 32, 30>}, {pipeline_mode = #tpu.pipeline_mode<synchronous>, transform_indices = @transform_2, window_bounds = array<i64: 32, 1>}, {pipeline_mode = #tpu.pipeline_mode<synchronous>, transform_indices = @transform_3, window_bounds = array<i64: 32, 1>}, {transform_indices = @transform_4, window_bounds = array<i64: 1>}, {transform_indices = @transform_5, window_bounds = array<i64: 1, 8>}]} {
    %c0 = arith.constant 0 : index
    %c0_0 = arith.constant 0 : index
    %0 = vector.load %arg2[%c0, %c0_0] : memref<32x30xf32, #tpu.memory_space<vmem>>, vector<32x30xf32>
    %c0_1 = arith.constant 0 : index
    %c0_2 = arith.constant 0 : index
    %1 = vector.load %arg1[%c0_1, %c0_2] : memref<30x8xf32, #tpu.memory_space<vmem>>, vector<30x8xf32>
    %cst = arith.constant dense<0.000000e+00> : vector<32x8xf32>
    %2 = tpu.matmul %0, %1, %cst {dimension_numbers = #tpu.dot_dimension_numbers<[1], [0], [0], [1], [0, 0, 1, 1], [], []>} : vector<32x30xf32>, vector<30x8xf32>, vector<32x8xf32> -> vector<32x8xf32>
    %c0_3 = arith.constant 0 : index
    %c0_4 = arith.constant 0 : index
    %3 = vector.load %arg3[%c0_3, %c0_4] : memref<32x1xf32, #tpu.memory_space<vmem>>, vector<32x1xf32>
    %4 = vector.broadcast %3 : vector<32x1xf32> to vector<32x8xf32>
    %5 = arith.addf %2, %4 : vector<32x8xf32>
    %cst_5 = arith.constant 0.000000e+00 : f32
    %6 = vector.broadcast %cst_5 : f32 to vector<32x8xf32>
    %7 = arith.maximumf %5, %6 : vector<32x8xf32>
    %c0_6 = arith.constant 0 : index
    %c0_7 = arith.constant 0 : index
    %8 = vector.load %arg4[%c0_6, %c0_7] : memref<32x1xf32, #tpu.memory_space<vmem>>, vector<32x1xf32>
    %9 = vector.broadcast %8 : vector<32x1xf32> to vector<32x8xf32>
    %10 = arith.mulf %7, %9 : vector<32x8xf32>
    %cst_8 = arith.constant dense<0.000000e+00> : vector<8xf32>
    %11 = vector.multi_reduction <add>, %10, %cst_8 [0] : vector<32x8xf32> to vector<8xf32>
    %12 = vector.shape_cast %11 : vector<8xf32> to vector<1x8xf32>
    %c0_9 = arith.constant 0 : index
    %13 = memref.load %arg5[%c0_9] : memref<1xf32, #tpu.memory_space<smem>>
    %14 = vector.broadcast %13 : f32 to vector<1x8xf32>
    %15 = arith.addf %12, %14 : vector<1x8xf32>
    %cst_10 = arith.constant 0.000000e+00 : f32
    %16 = vector.broadcast %cst_10 : f32 to vector<1x8xf32>
    %17 = arith.subf %16, %15 : vector<1x8xf32>
    %18 = math.exp %17 : vector<1x8xf32>
    %cst_11 = arith.constant 1.000000e+00 : f32
    %19 = vector.broadcast %cst_11 : f32 to vector<1x8xf32>
    %20 = arith.addf %19, %18 : vector<1x8xf32>
    %21 = tpu.reciprocal %20 {approx = true} : vector<1x8xf32> -> vector<1x8xf32>
    %c0_12 = arith.constant 0 : index
    %c0_13 = arith.constant 0 : index
    %22 = vector.load %arg6[%c0_12, %c0_13] : memref<1x8xf32, #tpu.memory_space<vmem>>, vector<1x8xf32>
    tpu.vector_store %arg6[%c0_12, %c0_13], %21 {strides = array<i32>} : memref<1x8xf32, #tpu.memory_space<vmem>>, vector<1x8xf32>,
    return
  }
  func.func @transform_0(%arg0: i32) -> (i32, i32) {
    %c0_i32 = arith.constant 0 : i32
    %c0_i32_0 = arith.constant 0 : i32
    return %c0_i32, %arg0 : i32, i32
  }
  func.func @transform_1(%arg0: i32) -> (i32, i32) {
    %c0_i32 = arith.constant 0 : i32
    %c0_i32_0 = arith.constant 0 : i32
    %c0_i32_1 = arith.constant 0 : i32
    return %c0_i32, %c0_i32_0 : i32, i32
  }
  func.func @transform_2(%arg0: i32) -> (i32, i32) {
    %c0_i32 = arith.constant 0 : i32
    %c0_i32_0 = arith.constant 0 : i32
    %c0_i32_1 = arith.constant 0 : i32
    return %c0_i32, %c0_i32_0 : i32, i32
  }
  func.func @transform_3(%arg0: i32) -> (i32, i32) {
    %c0_i32 = arith.constant 0 : i32
    %c0_i32_0 = arith.constant 0 : i32
    %c0_i32_1 = arith.constant 0 : i32
    return %c0_i32, %c0_i32_0 : i32, i32
  }
  func.func @transform_4(%arg0: i32) -> i32 {
    %c0_i32 = arith.constant 0 : i32
    %c0_i32_0 = arith.constant 0 : i32
    return %c0_i32 : i32
  }
  func.func @transform_5(%arg0: i32) -> (i32, i32) {
    %c0_i32 = arith.constant 0 : i32
    %c0_i32_0 = arith.constant 0 : i32
    return %c0_i32, %arg0 : i32, i32
  }
}

</mosaic_0001>

<bundles_post_ra>
// kernel: tpu_custom_call.1
= control target key start
LH: loop header
LB: loop body
LE: loop exit
PB: predicated region body
PF: predicated region fallthrough
CT: control target
= control target key end

     0   :  { %vm67_vm0 = vcmask 1045504   ;;  %vm54_vm1 = vcmask 244736   ;;  %vm300_vm2 = vmmov 1   ;;  %v301_v8 = vmov 0   ;;  %s412_s0 = inlined_call_operand.vmem [shape: f32[30,8], index: 0, kind: input, shape index: {}]   ;;  %s413_s1 = inlined_call_operand.vmem [shape: f32[32,30], index: 1, kind: input, shape index: {}]   ;;  %s414_s2 = inlined_call_operand.vmem [shape: f32[32,1], index: 2, kind: input, shape index: {}]   ;;  %s415_s3 = inlined_call_operand.vmem [shape: f32[32,1], index: 3, kind: input, shape index: {}]   ;;  %s416_s4 = inlined_call_operand.<no memory space> [shape: f32[1], index: 4, kind: input, shape index: {}]   ;;  %s417_s5 = inlined_call_operand.hbm [shape: f32[1,8], index: 5, kind: output, shape index: {}]  }
   0x1   :  { %v26_v0 = vld [vmem:[%s412_s0] sm:$0xff]  ;;  %v27_v1 = vld [vmem:[%s412_s0 + $0x8] sm:$0xff]  ;;  %v28_v2 = vld [vmem:[%s412_s0 + $0x10] sm:$0xff]  ;;  %270 = vset.pattern.permute.xlu0 %v301_v8 }
   0x2   :  { %v253_v3 = vpack.c.bf16 %v27_v1, %v26_v0  ;;  %v29_v4 = vld [vmem:[%s412_s0 + $0x18] sm:$0x3f]  ;;  %v22_v5 = vld [vmem:[%s413_s1] sm:$0xff]  ;;  %vm348_vm3 = vmpackc.low %vm67_vm0, %vm300_vm2 }
   0x3   :  { %v257_v6 = vpack.c.bf16 %v29_v4, %v28_v2  ;;  %247 = vmatprep.mubr.msk.f32.mxu0 %vm54_vm1, %v22_v5  ;;  %v24_v9 = vld [vmem:[%s413_s1 + $0x10] sm:$0xff]  ;;  %v30_v10 = vld [vmem:[%s414_s2] sm:$0xff] }
   0x4   :  { %254 = vmatprep.subr.bf16.mxu0 %v253_v3  ;;  %263 = vmatprep.subr.bf16.mxu1 %v253_v3 }
   0x5   :  { %256 = vmatpush3.bf16.msra.mxu0 %v253_v3  ;;  %265 = vmatpush3.bf16.msra.mxu1 %v253_v3 }
   0x6   :  { %259 = vmatprep.subr.msk.bf16.mxu0 %vm348_vm3, %v257_v6  ;;  %264 = vmatprep.subr.msk.bf16.mxu1 %vm348_vm3, %v257_v6 }
   0x7   :  { %11 = vsyncpa [#allocation4], 0  ;;  %250 = vmatprep.mubr.msk.f32.mxu1 %vm54_vm1, %v24_v9  ;;  %36 = vperm.xlu0 %270, %v30_v10   ;;  %v32_v11 = vld [vmem:[%s414_s2 + $0x10] sm:$0xff]  ;;  %v31_v12 = vld [vmem:[%s414_s2 + $0x8] sm:$0xff]  ;;  %vm188_vm4 = vcmask 64512   ;;  %v203_v56 = vstv %s416_s4  ;;  %s302_s23 = smov [#allocation3]  }
   0x8   :  { %271 = vset.pattern.permute.xlu1 %v301_v8  ;;  %v23_v13 = vld [vmem:[%s413_s1 + $0x8] sm:$0xff]  ;;  %v25_v14 = vld [vmem:[%s413_s1 + $0x18] sm:$0xff]  ;;  %v160_v16 = vld [vmem:[%s415_s3] sm:$0xff]  ;;  %s218_s24 = sshll.u32 %s302_s23, 4  ;;  %vm210_vm5 = vcmask 57344   ;;  %s219_s24 = int_to_ptr.vmem [resolvable:$true] %s218_s24 }
   0x9   :  { %262 = vmatpush3.bf16.msk.msra.mxu0 %vm348_vm3, %v257_v6  ;;  %266 = vmatpush3.bf16.msk.msra.mxu1 %vm348_vm3, %v257_v6  ;;  %v33_v15 = vld [vmem:[%s414_s2 + $0x18] sm:$0xff]  ;;  %v161_v17 = vld [vmem:[%s415_s3 + $0x8] sm:$0xff]  ;;  %v162_v18 = vld [vmem:[%s415_s3 + $0x10] sm:$0xff]  ;;  %s276_s25 = scalar_lea.vmem %s219_s24, 16  ;;  %s280_s26 = scalar_lea.vmem %s219_s24, 32 }
   0xa   :  { %46 = vperm.xlu1 %271, %v32_v11   ;;  %v163_v19 = vld [vmem:[%s415_s3 + $0x18] sm:$0xff]  ;;  %p277_p0 = scmp.ne.s32.totalorder %s219_s24, %s276_s25  ;;  %p281_p1 = scmp.lt.s32.totalorder %s219_s24, %s219_s24 }
   0xb   :  { %41 = vperm.xlu0 %270, %v31_v12   ;;  %p282_p2 = scmp.lt.s32.totalorder %s280_s26, %s276_s25 }
   0xc   :  { %248 = vmatmul.mubr.msk.f32.vlgmr.msra.gmra.mrb[0].mxu0 %vm54_vm1, %v23_v13  ;;  %251 = vmatmul.mubr.msk.f32.vlgmr.msra.gmra.mrb[0].mxu1 %vm54_vm1, %v25_v14 }
   0xd   :  { %p283_p3 = por %p282_p2, %p281_p1 }
   0xe   :  { %51 = vperm.xlu1 %271, %v33_v15  }
   0xf   :  { %166 = vperm.xlu0 %270, %v160_v16   ;;  %p284_p4 = pnand %p283_p3, %p277_p0 }
  0x12   :  { %171 = vperm.xlu1 %271, %v161_v17  }
  0x13   :  { %176 = vperm.xlu0 %270, %v162_v18  }
  0x16   :  { %181 = vperm.xlu1 %271, %v163_v19  }
  0x86   :  { %v37_v20 = vpop.permute.xlu0 %36 }
  0x89   :  { %v47_v21 = vpop.permute.xlu1 %46 }
  0x8a   :  { %v42_v22 = vpop.permute.xlu0 %41 }
  0x8d   :  { %v52_v23 = vpop.permute.xlu1 %51 }
  0x8e   :  { %v167_v24 = vpop.permute.xlu0 %166 }
  0x91   :  { %v172_v25 = vpop.permute.xlu1 %171 }
  0x92   :  { %v177_v38 = vpop.permute.xlu0 %176 }
  0x95   :  { %v182_v42 = vpop.permute.xlu1 %181 }
  0xdf   :  { %v249_v26 = vpop.f32.mrb[0].mxu0  ;;  %v252_v27 = vpop.f32.mrb[0].mxu1 }
  0xe0   :  { %v143_v28 = vadd.f32 %v249_v26, %v42_v22  ;;  %v153_v29 = vadd.f32 %v252_v27, %v52_v23  ;;  %v137_v30 = vpop.f32.mrb[1].mxu0  ;;  %v147_v31 = vpop.f32.mrb[1].mxu1 }
  0xe1   :  { %v138_v32 = vadd.f32 %v137_v30, %v37_v20  ;;  %v148_v33 = vadd.f32 %v147_v31, %v47_v21 }
  0xe2   :  { %v157_v34 = vmax.f32 %v143_v28, 0.0  ;;  %v159_v35 = vmax.f32 %v153_v29, 0.0 }
  0xe3   :  { %v156_v36 = vmax.f32 %v138_v32, 0.0  ;;  %v158_v37 = vmax.f32 %v148_v33, 0.0 }
  0xe4   :  { %v185_v39 = vmul.f32 %v172_v25, %v157_v34  ;;  %v187_v44 = vmul.f32 %v182_v42, %v159_v35 }
  0xe5   :  { %v184_v40 = vmul.f32 %v167_v24, %v156_v36  ;;  %v186_v41 = vmul.f32 %v177_v38, %v158_v37 }
  0xe6   :  { %v190_v43 = vsel %vm188_vm4, %v185_v39, 0.0  ;;  %v194_v49 = vsel %vm188_vm4, %v187_v44, 0.0 }
  0xe7   :  { %v189_v45 = vsel %vm188_vm4, %v184_v40, 0.0  ;;  %v192_v47 = vsel %vm188_vm4, %v186_v41, 0.0 }
  0xe8   :  { %v191_v46 = vadd.f32 %v190_v43, %v189_v45 }
  0xea   :  { %v193_v48 = vadd.f32 %v192_v47, %v191_v46 }
  0xec   :  { %v195_v50 = vadd.f32 %v194_v49, %v193_v48 }
  0xee   :  { %v196_v51 = vrot.slane %v195_v50, 4 }
  0xf0   :  { %v197_v52 = vadd.f32 %v196_v51, %v195_v50 }
  0xf2   :  { %v198_v53 = vrot.slane %v197_v52, 2 }
  0xf4   :  { %v199_v54 = vadd.f32 %v198_v53, %v197_v52 }
  0xf6   :  { %v200_v55 = vrot.slane %v199_v54, 1 }
  0xf8   :  { %v201_v57 = vadd.f32 %v200_v55, %v199_v54 }
  0xfa   :  { %v204_v58 = vadd.f32 %v203_v56, %v201_v57 }
  0xfc   :  { %v205_v59 = vsub.f32 0.0, %v204_v58 }
  0xfe   :  { %v206_v60 = vmul.f32 1.442695, %v205_v59 }
 0x100   :  { %272 = vpow2.f32 %v206_v60 }
 0x10a   :  { %v273_v61 = vpop.eup %272 }
 0x10b   :  { %v208_v62 = vadd.f32 1.0, %v273_v61 }
 0x10d   :  { %274 = vrcp.f32 %v208_v62 }
 0x117   :  { %v275_v63 = vpop.eup %274 }
 0x118   :  { %211 = vst.msk [vmem:[#allocation3] sm:$0x1] %vm210_vm5, %v275_v63 }
 0x119   :  { %287 = shalt.err (!%p284_p4)
}
 0x11a   :  { %s288_s28 = scalar_lea.hbm %s417_s5, 16 }
 0x11b   :  { %p289_p5 = scmp.ne.s32.totalorder %s417_s5, %s288_s28  ;;  %p292_p6 = scmp.lt.u32.totalorder %s288_s28, %s417_s5 }
 0x11d   :  { %p294_p7 = pnand %p292_p6, %p289_p5 }
 0x11f   :  { %297 = shalt.err (!%p294_p7)
}
 0x120   :  { %221 = dma.vmem_to_hbm [thread:$0]  %s219_s24, 16, %s417_s5, [#allocation4]  }
 0x121   :  { %298 = dma.done.wait [#allocation4], 16  }
 0x122   :  { %299 = vsyncadd [#allocation4], 4294967280 }
 0x123   :  { %225 = vsyncpa [#allocation4], 1 }

</bundles_post_ra>
